<compile_context>
chip_gen: v6e
topology: v6e:2x2x1
jax: 0.10.0
libtpu: 0.0.40
codegen_flags: <defaults>
</compile_context>

<pallas_src>
import functools
from typing import NamedTuple, Optional

import jax
import jax.numpy as jnp
from jax import lax
from jax.experimental import pallas as pl
from jax.experimental.pallas import tpu as pltpu

_BN_EPS = 1e-5


def _round_up(x, m):
    return (x + m - 1) // m * m


def _pad2(a, rows, cols):
    pr, pc = rows - a.shape[0], cols - a.shape[1]
    if pr or pc:
        a = jnp.pad(a, ((0, pr), (0, pc)))
    return a


def _vmem_capacity_bytes():
    try:
        return int(pltpu.get_tpu_info().vmem_capacity_bytes)
    except Exception:
        return 64 * 1024 * 1024  # v7x-safe fallback


def _select_tiling(cout, cin_pad, batch_hint, itemsize, budget_bytes):
    """Pick the Cout tile (lane) width and padded Cout."""
    cout_pad0 = _round_up(cout, 128)
    b_pad = _round_up(max(int(batch_hint), 1), 8)
    tn = 128
    for cand in (1024, 512, 256, 128):
        padded = _round_up(cout_pad0, cand)
        if padded > cout_pad0 + cout_pad0 // 4:
            continue  # too much extra Cout padding just to enlarge the tile
        need = (2 * cand * cin_pad * itemsize      # double-buffered weight tile
                + 2 * 8 * cand * 4                 # packed bias/gamma/beta tile
                + 2 * b_pad * cand * 4             # double-buffered output tile
                + 2 * b_pad * cin_pad * itemsize)  # resident activations
        if need <= budget_bytes:
            tn = cand
            break
    cout_pad = _round_up(cout_pad0, tn)
    # prefer >=2 grid steps so dimension_semantics=('parallel',) can shard the
    # Cout tiles across v7x's two TensorCores
    while tn > 128 and cout_pad // tn < 2:
        tn //= 2
        cout_pad = _round_up(cout_pad0, tn)
    return tn, cout_pad


class BlockParams(NamedTuple):
    w1: jax.Array                 # (K1_pad, Cout_pad), matmul_dtype, (K,N) layout
    w2: Optional[jax.Array]       # (K2_pad, Cout_pad) or None (single-matmul path)
    params: jax.Array             # (8, Cout_pad) f32; rows 0/1/2 = bias/gamma/beta
    c1: int
    c2: int
    cout: int
    tile_n: int
    matmul_dtype: jnp.dtype


def prepare_block_params(weight, bias, gamma=None, beta=None, *, c1=None,
                         matmul_dtype=jnp.float32, batch_hint=128,
                         vmem_budget_bytes=None):
    """One-time parameter prep (slice/pad/transpose/cast the static weights)."""
    weight = jnp.asarray(weight, jnp.float32)
    bias = jnp.asarray(bias, jnp.float32)
    cout, cin = weight.shape
    if c1 is None:
        c1 = cin
    c2 = cin - c1
    assert 0 <= c2 <= cin

    itemsize = jnp.dtype(matmul_dtype).itemsize
    if vmem_budget_bytes is None:
        vmem_budget_bytes = int(0.55 * _vmem_capacity_bytes())

    # Split (fused-concat) path only when C1 is lane aligned -> no double padding
    # of Cin; otherwise pre-concatenate the static weight into one padded Cin.
    split = (c2 > 0) and (c1 % 128 == 0)
    if split:
        k1_pad, k2_pad = c1, _round_up(c2, 128)
        cin_pad_total = k1_pad + k2_pad
    else:
        k1_pad, k2_pad = _round_up(cin, 128), 0
        cin_pad_total = k1_pad

    tn, cout_pad = _select_tiling(cout, cin_pad_total, batch_hint, itemsize,
                                  vmem_budget_bytes)

    wt = weight.T  # (Cin, Cout): canonical (K, N), lane-dense in Cout
    if split:
        w1 = _pad2(wt[:c1], k1_pad, cout_pad).astype(matmul_dtype)
        w2 = _pad2(wt[c1:], k2_pad, cout_pad).astype(matmul_dtype)
    else:
        w1 = _pad2(wt, k1_pad, cout_pad).astype(matmul_dtype)
        w2 = None

    if gamma is None:
        gamma = jnp.ones((cout,), jnp.float32)
    if beta is None:
        beta = jnp.zeros((cout,), jnp.float32)
    params = jnp.zeros((8, cout_pad), jnp.float32)
    params = params.at[0, :cout].set(bias)
    params = params.at[1, :cout].set(jnp.asarray(gamma, jnp.float32))
    params = params.at[2, :cout].set(jnp.asarray(beta, jnp.float32))

    return BlockParams(w1=w1, w2=w2, params=params, c1=c1, c2=c2, cout=cout,
                       tile_n=tn, matmul_dtype=jnp.dtype(matmul_dtype))


def _block_kernel(*refs, has_x2, batch_normalization, activation, b_real, bn_eps):
    if has_x2:
        x1_ref, x2_ref, w1_ref, w2_ref, p_ref, o_ref = refs
    else:
        x1_ref, w1_ref, p_ref, o_ref = refs
        x2_ref = w2_ref = None

    # Canonical (M, K) x (K, N) matmul on the MXU, f32 accumulation; operands
    # were already cast to matmul_dtype in the wrapper/prep (no per-tile casts).
    z = jnp.dot(x1_ref[...], w1_ref[...], preferred_element_type=jnp.float32)
    if has_x2:
        z = z + jnp.dot(x2_ref[...], w2_ref[...],
                        preferred_element_type=jnp.float32)

    p = p_ref[...]                     # (8, tn) f32, rows: bias / gamma / beta
    z = z + p[0:1, :]

    if batch_normalization:
        # BatchNorm1d, training-mode batch statistics over the REAL batch rows
        # only (padded rows masked out); two-pass (mean, then centered variance)
        # for numerical stability; rsqrt on the EUP.
        gamma = p[1:2, :]
        beta = p[2:3, :]
        b_pad = z.shape[0]
        inv_n = jnp.float32(1.0 / b_real)
        if b_pad != b_real:
            row_ids = lax.broadcasted_iota(jnp.int32, (b_pad, 1), 0)
            valid = row_ids < b_real
            zm = jnp.where(valid, z, 0.0)
            mean = jnp.sum(zm, axis=0, keepdims=True) * inv_n
            diff = jnp.where(valid, z - mean, 0.0)
        else:
            mean = jnp.sum(z, axis=0, keepdims=True) * inv_n
            diff = z - mean
        var = jnp.sum(diff * diff, axis=0, keepdims=True) * inv_n
        z = (z - mean) * lax.rsqrt(var + bn_eps) * gamma + beta

    if activation == "relu":
        z = jnp.maximum(z, 0.0)
    elif activation == "tanh":
        z = jnp.tanh(z)
    elif activation == "sigmoid":
        z = jax.nn.sigmoid(z)
    elif activation in (None, "identity"):
        pass
    else:
        raise ValueError(f"unsupported activation: {activation}")

    # TODO(synk): stochastic Dropout (training, rate>0) and BatchNorm eval-mode
    # running statistics are not implemented; with the module default
    # dropout_rate=0.0 (or eval mode) dropout is the identity.
    o_ref[...] = z.astype(o_ref.dtype)


def block_forward(x1, x2, bp: BlockParams, *, batch_normalization=False,
                  activation="relu", out_dtype=jnp.float32, keep_padded=False):
    """Mirrors Block.forward using pre-prepared parameters (BlockParams)."""
    B = x1.shape[0]
    assert x1.shape[1] == bp.c1, (x1.shape, bp.c1)
    if bp.c2 > 0:
        assert x2 is not None and x2.shape == (B, bp.c2), (None if x2 is None
                                                           else x2.shape)
    else:
        assert x2 is None, "prep was done without an x2 split"

    b_pad = _round_up(B, 8)
    cout_pad = bp.params.shape[1]
    tn = bp.tile_n
    dt = bp.matmul_dtype
    has_x2 = bp.w2 is not None

    if has_x2:
        k1_pad, k2_pad = bp.w1.shape[0], bp.w2.shape[0]
        x1p = _pad2(x1.astype(dt), b_pad, k1_pad)
        x2p = _pad2(x2.astype(dt), b_pad, k2_pad)
        args = [x1p, x2p, bp.w1, bp.w2, bp.params]
        in_specs = [
            pl.BlockSpec((b_pad, k1_pad), lambda j: (0, 0)),
            pl.BlockSpec((b_pad, k2_pad), lambda j: (0, 0)),
            pl.BlockSpec((k1_pad, tn), lambda j: (0, j)),
            pl.BlockSpec((k2_pad, tn), lambda j: (0, j)),
            pl.BlockSpec((8, tn), lambda j: (0, j)),
        ]
    else:
        k_pad = bp.w1.shape[0]
        x = jnp.concatenate([x1, x2], axis=1) if bp.c2 > 0 else x1
        xp = _pad2(x.astype(dt), b_pad, k_pad)
        args = [xp, bp.w1, bp.params]
        in_specs = [
            pl.BlockSpec((b_pad, k_pad), lambda j: (0, 0)),
            pl.BlockSpec((k_pad, tn), lambda j: (0, j)),
            pl.BlockSpec((8, tn), lambda j: (0, j)),
        ]

    kernel = functools.partial(
        _block_kernel, has_x2=has_x2, batch_normalization=batch_normalization,
        activation=activation, b_real=B, bn_eps=_BN_EPS)

    vmem_limit = max(32 * 1024 * 1024, int(0.75 * _vmem_capacity_bytes()))

    out = pl.pallas_call(
        kernel,
        out_shape=jax.ShapeDtypeStruct((b_pad, cout_pad), out_dtype),
        grid=(cout_pad // tn,),
        in_specs=in_specs,
        out_specs=pl.BlockSpec((b_pad, tn), lambda j: (0, j)),
        compiler_params=pltpu.CompilerParams(
            dimension_semantics=("parallel",),   # Cout tiles are independent
            vmem_limit_bytes=vmem_limit,
        ),
    )(*args)

    if keep_padded:
        return out
    return out[:B, :bp.cout]


def _reference(x1, x2, weight, bias, gamma, beta, bn):
    x = jnp.concatenate([x1, x2], axis=1) if x2 is not None else x1
    z = x @ weight.T + bias
    if bn:
        mean = z.mean(axis=0, keepdims=True)
        var = ((z - mean) ** 2).mean(axis=0, keepdims=True)
        z = (z - mean) / jnp.sqrt(var + _BN_EPS) * gamma + beta
    return jnp.maximum(z, 0.0)


if __name__ == "__main__":
    key = jax.random.PRNGKey(0)
    k1, k2, kw, kb, k3, k4, kw2, kb2 = jax.random.split(key, 8)

    B = 8             # batch
    C1, C2 = 16, 16   # features of x1 / x2 (concatenated -> in_channels = 32)
    Cin = C1 + C2
    Cout = 32         # out_channels

    x1 = jax.random.normal(k1, (B, C1), dtype=jnp.float32)
    x2 = jax.random.normal(k2, (B, C2), dtype=jnp.float32)
    bound = 1.0 / (Cin ** 0.5)
    weight = jax.random.uniform(kw, (Cout, Cin), minval=-bound, maxval=bound,
                                dtype=jnp.float32)
    bias = jax.random.uniform(kb, (Cout,), minval=-bound, maxval=bound,
                              dtype=jnp.float32)
    gamma = jnp.ones((Cout,), dtype=jnp.float32)   # BatchNorm1d weight init
    beta = jnp.zeros((Cout,), dtype=jnp.float32)   # BatchNorm1d bias init

    # 1) f32: concat (wrapper path; C1 not lane aligned) + Linear + BN + ReLU
    bp = prepare_block_params(weight, bias, gamma, beta, c1=C1, batch_hint=B)
    out = block_forward(x1, x2, bp, batch_normalization=True, activation="relu")
    jax.block_until_ready(out)
    ref = _reference(x1, x2, weight, bias, gamma, beta, bn=True)
    assert out.shape == (B, Cout)
    assert jnp.allclose(out, ref, atol=1e-4, rtol=1e-4), "f32 mismatch vs reference"

    # 2) bf16 MXU operands (cast once at prep/wrapper), f32 accumulation
    bp16 = prepare_block_params(weight, bias, gamma, beta, c1=C1,
                                matmul_dtype=jnp.bfloat16, batch_hint=B)
    out16 = block_forward(x1, x2, bp16, batch_normalization=True)
    jax.block_until_ready(out16)
    assert jnp.allclose(out16, ref, atol=5e-2, rtol=5e-2), "bf16 mismatch vs reference"

    # 3) batch not a multiple of 8 -> exercises the BN row-masking path
    Bo = 5
    out_odd = block_forward(x1[:Bo], x2[:Bo], bp, batch_normalization=True)
    jax.block_until_ready(out_odd)
    ref_odd = _reference(x1[:Bo], x2[:Bo], weight, bias, gamma, beta, bn=True)
    assert jnp.allclose(out_odd, ref_odd, atol=1e-4, rtol=1e-4), "odd-batch mismatch"

    # 4) x2=None, no BN (plain Linear + ReLU)
    bp_s = prepare_block_params(weight[:, :C1], bias, batch_hint=B)
    out_s = block_forward(x1, None, bp_s, batch_normalization=False)
    jax.block_until_ready(out_s)
    ref_s = _reference(x1, None, weight[:, :C1], bias, gamma, beta, bn=False)
    assert jnp.allclose(out_s, ref_s, atol=1e-4, rtol=1e-4), "no-x2 mismatch"

    # 5) lane-aligned C1 -> fused-concat split path + multi-step Cout grid
    C1b = C2b = 128
    Coutb = 256
    x1b = jax.random.normal(k3, (B, C1b), dtype=jnp.float32)
    x2b = jax.random.normal(k4, (B, C2b), dtype=jnp.float32)
    boundb = 1.0 / ((C1b + C2b) ** 0.5)
    wb = jax.random.uniform(kw2, (Coutb, C1b + C2b), minval=-boundb,
                            maxval=boundb, dtype=jnp.float32)
    bb = jax.random.uniform(kb2, (Coutb,), minval=-boundb, maxval=boundb,
                            dtype=jnp.float32)
    bp_b = prepare_block_params(wb, bb, c1=C1b, batch_hint=B)
    assert bp_b.w2 is not None  # split path actually taken
    out_b = block_forward(x1b, x2b, bp_b, batch_normalization=True)
    jax.block_until_ready(out_b)
    ref_b = _reference(x1b, x2b, wb, bb, jnp.ones((Coutb,)), jnp.zeros((Coutb,)),
                       bn=True)
    assert jnp.allclose(out_b, ref_b, atol=1e-4, rtol=1e-4), "split-path mismatch"

    print("KERNEL_OK")
</pallas_src>

<mosaic_0001>
module attributes {stable_mosaic.version = 11 : i64} {
  func.func @_block_kernel(%arg0: i32, %arg1: memref<8x128xf32, #tpu.memory_space<vmem>>, %arg2: memref<128x128xf32, #tpu.memory_space<vmem>>, %arg3: memref<8x128xf32, #tpu.memory_space<vmem>>, %arg4: memref<8x128xf32, #tpu.memory_space<vmem>>) attributes {dimension_semantics = [#tpu.dimension_semantics<parallel>], iteration_bounds = array<i64: 1>, scalar_prefetch = 0 : i64, scratch_operands = 0 : i64, tpu.core_type = #tpu.core_type<tc>, window_params = [{pipeline_mode = #tpu.pipeline_mode<synchronous>, transform_indices = @transform_0, window_bounds = array<i64: 8, 128>}, {transform_indices = @transform_1, window_bounds = array<i64: 128, 128>}, {transform_indices = @transform_2, window_bounds = array<i64: 8, 128>}, {transform_indices = @transform_3, window_bounds = array<i64: 8, 128>}]} {
    %c0 = arith.constant 0 : index
    %c0_0 = arith.constant 0 : index
    %0 = vector.load %arg1[%c0, %c0_0] : memref<8x128xf32, #tpu.memory_space<vmem>>, vector<8x128xf32>
    %c0_1 = arith.constant 0 : index
    %c0_2 = arith.constant 0 : index
    %1 = vector.load %arg2[%c0_1, %c0_2] : memref<128x128xf32, #tpu.memory_space<vmem>>, vector<128x128xf32>
    %cst = arith.constant dense<0.000000e+00> : vector<8x128xf32>
    %2 = tpu.matmul %0, %1, %cst {dimension_numbers = #tpu.dot_dimension_numbers<[1], [0], [0], [1], [0, 0, 1, 1], [], []>} : vector<8x128xf32>, vector<128x128xf32>, vector<8x128xf32> -> vector<8x128xf32>
    %c0_3 = arith.constant 0 : index
    %c0_4 = arith.constant 0 : index
    %3 = vector.load %arg3[%c0_3, %c0_4] : memref<8x128xf32, #tpu.memory_space<vmem>>, vector<8x128xf32>
    %4 = vector.extract_strided_slice %3 {offsets = [0, 0], sizes = [1, 128], strides = [1, 1]} : vector<8x128xf32> to vector<1x128xf32>
    %5 = vector.broadcast %4 : vector<1x128xf32> to vector<8x128xf32>
    %6 = arith.addf %2, %5 : vector<8x128xf32>
    %7 = vector.extract_strided_slice %3 {offsets = [1, 0], sizes = [1, 128], strides = [1, 1]} : vector<8x128xf32> to vector<1x128xf32>
    %8 = vector.extract_strided_slice %3 {offsets = [2, 0], sizes = [1, 128], strides = [1, 1]} : vector<8x128xf32> to vector<1x128xf32>
    %cst_5 = arith.constant dense<0.000000e+00> : vector<128xf32>
    %9 = vector.multi_reduction <add>, %6, %cst_5 [0] : vector<8x128xf32> to vector<128xf32>
    %10 = vector.shape_cast %9 : vector<128xf32> to vector<1x128xf32>
    %cst_6 = arith.constant 1.250000e-01 : f32
    %11 = vector.broadcast %cst_6 : f32 to vector<1x128xf32>
    %12 = arith.mulf %10, %11 : vector<1x128xf32>
    %13 = vector.broadcast %12 : vector<1x128xf32> to vector<8x128xf32>
    %14 = arith.subf %6, %13 : vector<8x128xf32>
    %15 = arith.mulf %14, %14 : vector<8x128xf32>
    %cst_7 = arith.constant dense<0.000000e+00> : vector<128xf32>
    %16 = vector.multi_reduction <add>, %15, %cst_7 [0] : vector<8x128xf32> to vector<128xf32>
    %17 = vector.shape_cast %16 : vector<128xf32> to vector<1x128xf32>
    %cst_8 = arith.constant 1.250000e-01 : f32
    %18 = vector.broadcast %cst_8 : f32 to vector<1x128xf32>
    %19 = arith.mulf %17, %18 : vector<1x128xf32>
    %20 = vector.broadcast %12 : vector<1x128xf32> to vector<8x128xf32>
    %21 = arith.subf %6, %20 : vector<8x128xf32>
    %cst_9 = arith.constant 9.99999974E-6 : f32
    %22 = vector.broadcast %cst_9 : f32 to vector<1x128xf32>
    %23 = arith.addf %19, %22 : vector<1x128xf32>
    %24 = math.rsqrt %23 : vector<1x128xf32>
    %25 = vector.broadcast %24 : vector<1x128xf32> to vector<8x128xf32>
    %26 = arith.mulf %21, %25 : vector<8x128xf32>
    %27 = vector.broadcast %7 : vector<1x128xf32> to vector<8x128xf32>
    %28 = arith.mulf %26, %27 : vector<8x128xf32>
    %29 = vector.broadcast %8 : vector<1x128xf32> to vector<8x128xf32>
    %30 = arith.addf %28, %29 : vector<8x128xf32>
    %cst_10 = arith.constant 0.000000e+00 : f32
    %31 = vector.broadcast %cst_10 : f32 to vector<8x128xf32>
    %32 = arith.maximumf %30, %31 : vector<8x128xf32>
    %c0_11 = arith.constant 0 : index
    %c0_12 = arith.constant 0 : index
    %33 = vector.load %arg4[%c0_11, %c0_12] : memref<8x128xf32, #tpu.memory_space<vmem>>, vector<8x128xf32>
    tpu.vector_store %arg4[%c0_11, %c0_12], %32 {strides = array<i32>} : memref<8x128xf32, #tpu.memory_space<vmem>>, vector<8x128xf32>,
    return
  }
  func.func @transform_0(%arg0: i32) -> (i32, i32) {
    %c0_i32 = arith.constant 0 : i32
    %c0_i32_0 = arith.constant 0 : i32
    %c0_i32_1 = arith.constant 0 : i32
    return %c0_i32, %c0_i32_0 : i32, i32
  }
  func.func @transform_1(%arg0: i32) -> (i32, i32) {
    %c0_i32 = arith.constant 0 : i32
    %c0_i32_0 = arith.constant 0 : i32
    return %c0_i32, %arg0 : i32, i32
  }
  func.func @transform_2(%arg0: i32) -> (i32, i32) {
    %c0_i32 = arith.constant 0 : i32
    %c0_i32_0 = arith.constant 0 : i32
    return %c0_i32, %arg0 : i32, i32
  }
  func.func @transform_3(%arg0: i32) -> (i32, i32) {
    %c0_i32 = arith.constant 0 : i32
    %c0_i32_0 = arith.constant 0 : i32
    return %c0_i32, %arg0 : i32, i32
  }
}

</mosaic_0001>

<bundles_post_ra>
// kernel: tpu_custom_call.1
= control target key start
LH: loop header
LB: loop body
LE: loop exit
PB: predicated region body
PF: predicated region fallthrough
CT: control target
= control target key end

     0   :  { %8 = vsyncpa [#allocation3], 0  ;;  %s379_s0 = inlined_call_operand.hbm [shape: f32[8,128], index: 0, kind: input, shape index: {}]   ;;  %s380_s1 = inlined_call_operand.hbm [shape: f32[128,128], index: 1, kind: input, shape index: {}]   ;;  %s381_s2 = inlined_call_operand.hbm [shape: f32[8,128], index: 2, kind: input, shape index: {}]   ;;  %s382_s3 = inlined_call_operand.hbm [shape: f32[8,128], index: 3, kind: output, shape index: {}]  }
   0x1   :  { %9 = vsyncpa [#allocation6], 0 }
   0x2   :  { %10 = vsyncpa [#allocation4], 0  ;;  %s339_s12 = smov [#allocation5]  }
   0x3   :  { %s26_s13 = sshll.u32 %s339_s12, 4  ;;  %s27_s13 = int_to_ptr.vmem [resolvable:$true] %s26_s13 }
   0x4   :  { %s261_s14 = scalar_lea.vmem %s27_s13, 2048  ;;  %p266_p1 = scmp.lt.s32.totalorder %s27_s13, %s27_s13 }
   0x5   :  { %p262_p0 = scmp.ne.s32.totalorder %s27_s13, %s261_s14  ;;  %p267_p2 = scmp.lt.s32.totalorder %s261_s14, %s261_s14 }
   0x7   :  { %p268_p3 = por %p267_p2, %p266_p1 }
   0x9   :  { %p269_p4 = pnand %p268_p3, %p262_p0 }
   0xb   :  { %272 = shalt.err (!%p269_p4)
}
   0xc   :  { %s340_s15 = smov 128   ;;  %s341_s16 = smov 8  }
   0xd   :  { %32 = dma.hbm_to_vmem [thread:$0]  %s380_s1, 2048, %s27_s13, [#allocation6], %s340_s15, %s340_s15, %s341_s16  }
   0xe   :  { %s342_s19 = smov [#allocation2]   ;;  %s343_s21 = smov [#allocation7]  }
   0xf   :  { %s17_s20 = sshll.u32 %s342_s19, 4  ;;  %s39_s22 = sshll.u32 %s343_s21, 4  ;;  %s18_s20 = int_to_ptr.vmem [resolvable:$true] %s17_s20  ;;  %s40_s22 = int_to_ptr.vmem [resolvable:$true] %s39_s22 }
  0x10   :  { %s281_s23 = scalar_lea.vmem %s18_s20, 128  ;;  %p286_p6 = scmp.lt.s32.totalorder %s18_s20, %s18_s20 }
  0x11   :  { %p282_p5 = scmp.ne.s32.totalorder %s18_s20, %s281_s23  ;;  %p287_p7 = scmp.lt.s32.totalorder %s281_s23, %s281_s23 }
  0x13   :  { %p288_p8 = por %p287_p7, %p286_p6 }
  0x15   :  { %p289_p9 = pnand %p288_p8, %p282_p5 }
  0x17   :  { %292 = shalt.err (!%p289_p9)
}
  0x18   :  { %20 = dma.hbm_to_vmem [thread:$0]  %s379_s0, 128, %s18_s20, [#allocation3]  }
  0x19   :  { %s301_s26 = scalar_lea.vmem %s40_s22, 128  ;;  %p306_p11 = scmp.lt.s32.totalorder %s40_s22, %s40_s22 }
  0x1a   :  { %p302_p10 = scmp.ne.s32.totalorder %s40_s22, %s301_s26  ;;  %p307_p12 = scmp.lt.s32.totalorder %s301_s26, %s301_s26 }
  0x1c   :  { %p308_p13 = por %p307_p12, %p306_p11 }
  0x1e   :  { %p309_p0 = pnand %p308_p13, %p302_p10 }
  0x20   :  { %312 = shalt.err (!%p309_p0)
}
  0x21   :  { %42 = dma.hbm_to_vmem [thread:$0]  %s381_s2, 128, %s40_s22, [#allocation6]  }
  0x22   :  { %333 = dma.done.wait [#allocation3], 128  }
  0x23   :  { %334 = vsyncadd [#allocation3], 4294967168 }
  0x24   :  { %335 = dma.done.wait [#allocation6], 2176  }
  0x25   :  { %336 = vsyncadd [#allocation6], 4294965120  ;;  %v344_v0 = vmov 0.0   ;;  %vm345_vm0 = vmmov 0   ;;  %v68_v1 = vld [vmem:[#allocation5 + $0x78] sm:$0xff]  ;;  %v67_v2 = vld [vmem:[#allocation5 + $0x70] sm:$0xff]  ;;  %v70_v18 = vlaneseq }
  0x26   :  { %208 = vmatprep.subr.mxu0 %v344_v0  ;;  %240 = vmatprep.mubr.msk.f32.mxu0 %vm345_vm0, %v344_v0  ;;  %v66_v3 = vld [vmem:[#allocation5 + $0x68] sm:$0xff]  ;;  %v65_v4 = vld [vmem:[#allocation5 + $0x60] sm:$0xff]  ;;  %v64_v5 = vld [vmem:[#allocation5 + $0x58] sm:$0xff]  ;;  %s346_s0 = smov [#allocation8]  }
  0x27   :  { %209 = vmatpush3.msra.mxu0 %v68_v1  ;;  %v63_v6 = vld [vmem:[#allocation5 + $0x50] sm:$0xff]  ;;  %v62_v7 = vld [vmem:[#allocation5 + $0x48] sm:$0xff]  ;;  %v61_v8 = vld [vmem:[#allocation5 + $0x40] sm:$0xff]  ;;  %v71_v19 = vshrl.u32 %v70_v18, 7  ;;  %s181_s2 = sshll.u32 %s346_s0, 4  ;;  %s182_s2 = int_to_ptr.vmem [resolvable:$true] %s181_s2 }
  0x28   :  { %210 = vmatprep.subr.mxu0 %v344_v0  ;;  %v60_v9 = vld [vmem:[#allocation5 + $0x38] sm:$0xff]  ;;  %v59_v10 = vld [vmem:[#allocation5 + $0x30] sm:$0xff]  ;;  %v58_v11 = vld [vmem:[#allocation5 + $0x28] sm:$0xff]  ;;  %s313_s28 = scalar_lea.vmem %s182_s2, 128  ;;  %p318_p2 = scmp.lt.s32.totalorder %s182_s2, %s182_s2 }
  0x29   :  { %211 = vmatpush3.msra.mxu0 %v67_v2  ;;  %v57_v12 = vld [vmem:[#allocation5 + $0x20] sm:$0xff]  ;;  %v56_v13 = vld [vmem:[#allocation5 + $0x18] sm:$0xff]  ;;  %v55_v14 = vld [vmem:[#allocation5 + $0x10] sm:$0xff]  ;;  %v72_v20 = vsub.s32 0, %v71_v19  ;;  %v165_v43 = vsub.s32 1, %v71_v19  ;;  %v170_v44 = vsub.s32 2, %v71_v19  ;;  %p314_p1 = scmp.ne.s32.totalorder %s182_s2, %s313_s28  ;;  %p319_p3 = scmp.lt.s32.totalorder %s313_s28, %s313_s28 }
  0x2a   :  { %212 = vmatprep.subr.mxu0 %v344_v0  ;;  %v54_v15 = vld [vmem:[#allocation5 + $0x8] sm:$0xff]  ;;  %v53_v16 = vld [vmem:[#allocation5] sm:$0xff]  ;;  %v52_v17 = vld [vmem:[#allocation2] sm:$0xff] }
  0x2b   :  { %213 = vmatpush3.msra.mxu0 %v66_v3  ;;  %v69_v21 = vld [vmem:[#allocation7] sm:$0xff]  ;;  %p320_p4 = por %p319_p3, %p318_p2 }
  0x2c   :  { %214 = vmatprep.subr.mxu0 %v344_v0  ;;  %v73_v22 = vrot.slane %v69_v21, %v72_v20  ;;  %v166_v45 = vrot.slane %v69_v21, %v165_v43  ;;  %v171_v48 = vrot.slane %v69_v21, %v170_v44 }
  0x2d   :  { %215 = vmatpush3.msra.mxu0 %v65_v4  ;;  %p321_p5 = pnand %p320_p4, %p314_p1 }
  0x2e   :  { %216 = vmatprep.subr.mxu0 %v344_v0 }
  0x2f   :  { %217 = vmatpush3.msra.mxu0 %v64_v5 }
  0x30   :  { %218 = vmatprep.subr.mxu0 %v344_v0 }
  0x31   :  { %219 = vmatpush3.msra.mxu0 %v63_v6 }
  0x32   :  { %220 = vmatprep.subr.mxu0 %v344_v0 }
  0x33   :  { %221 = vmatpush3.msra.mxu0 %v62_v7 }
  0x34   :  { %222 = vmatprep.subr.mxu0 %v344_v0 }
  0x35   :  { %223 = vmatpush3.msra.mxu0 %v61_v8 }
  0x36   :  { %224 = vmatprep.subr.mxu0 %v344_v0 }
  0x37   :  { %225 = vmatpush3.msra.mxu0 %v60_v9 }
  0x38   :  { %226 = vmatprep.subr.mxu0 %v344_v0 }
  0x39   :  { %227 = vmatpush3.msra.mxu0 %v59_v10 }
  0x3a   :  { %228 = vmatprep.subr.mxu0 %v344_v0 }
  0x3b   :  { %229 = vmatpush3.msra.mxu0 %v58_v11 }
  0x3c   :  { %230 = vmatprep.subr.mxu0 %v344_v0 }
  0x3d   :  { %231 = vmatpush3.msra.mxu0 %v57_v12 }
  0x3e   :  { %232 = vmatprep.subr.mxu0 %v344_v0 }
  0x3f   :  { %233 = vmatpush3.msra.mxu0 %v56_v13 }
  0x40   :  { %234 = vmatprep.subr.mxu0 %v344_v0 }
  0x41   :  { %235 = vmatpush3.msra.mxu0 %v55_v14 }
  0x42   :  { %236 = vmatprep.subr.mxu0 %v344_v0 }
  0x43   :  { %237 = vmatpush3.msra.mxu0 %v54_v15 }
  0x44   :  { %238 = vmatprep.subr.mxu0 %v344_v0 }
  0x45   :  { %239 = vmatpush3.msra.mxu0 %v53_v16 }
  0x46   :  { %241 = vmatmul.mubr.f32.vlgmr.msra.gmra.mxu0 %v52_v17 }
 0x106   :  { %v140_v23 = vpop.f32.mrf.mxu0 }
 0x107   :  { %v141_v24 = vadd.f32 %v140_v23, %v73_v22 }
 0x108   :  { %v242_v25 = vpop.f32.mrf.mxu0 }
 0x109   :  { %v144_v26 = vrot.slane %v141_v24, 4 }
 0x10b   :  { %v145_v27 = vadd.f32 %v144_v26, %v141_v24 }
 0x10d   :  { %v146_v28 = vrot.slane %v145_v27, 2 }
 0x10f   :  { %v147_v29 = vadd.f32 %v146_v28, %v145_v27 }
 0x111   :  { %v148_v30 = vrot.slane %v147_v29, 1 }
 0x113   :  { %v149_v31 = vadd.f32 %v148_v30, %v147_v29 }
 0x115   :  { %v150_v32 = vmul.f32 0.125, %v149_v31 }
 0x117   :  { %v151_v33 = vsub.f32 %v141_v24, %v150_v32 }
 0x119   :  { %v152_v34 = vmul.f32 %v151_v33, %v151_v33 }
 0x11b   :  { %v153_v35 = vrot.slane %v152_v34, 4 }
 0x11d   :  { %v154_v36 = vadd.f32 %v153_v35, %v152_v34 }
 0x11f   :  { %v155_v37 = vrot.slane %v154_v36, 2 }
 0x121   :  { %v156_v38 = vadd.f32 %v155_v37, %v154_v36 }
 0x123   :  { %v157_v39 = vrot.slane %v156_v38, 1 }
 0x125   :  { %v158_v40 = vadd.f32 %v157_v39, %v156_v38 }
 0x127   :  { %v159_v41 = vmul.f32 0.125, %v158_v40 }
 0x129   :  { %v160_v42 = vadd.f32 1e-05, %v159_v41 }
 0x12b   :  { %251 = vrsqrt.f32 %v160_v42 }
 0x138   :  { %v252_v46 = vpop.eup %251 }
 0x139   :  { %v162_v47 = vmul.f32 %v252_v46, %v151_v33 }
 0x13b   :  { %v167_v49 = vmul.f32 %v166_v45, %v162_v47 }
 0x13d   :  { %v172_v50 = vadd.f32 %v171_v48, %v167_v49 }
 0x13f   :  { %v173_v51 = vmax.f32 %v172_v50, 0.0 }
 0x141   :  { %174 = vst [vmem:[#allocation8] sm:$0xff] %v173_v51 }
 0x142   :  { %324 = shalt.err (!%p321_p5)
}
 0x143   :  { %184 = dma.vmem_to_hbm [thread:$0]  %s182_s2, 128, %s382_s3, [#allocation4]  }
 0x144   :  { %337 = dma.done.wait [#allocation4], 128  }
 0x145   :  { %338 = vsyncadd [#allocation4], 4294967168 }
 0x146   :  { %188 = vsyncpa [#allocation3], 1 }
 0x147   :  { %189 = vsyncpa [#allocation6], 1 }
 0x148   :  { %190 = vsyncpa [#allocation4], 1 }

</bundles_post_ra>
